<compile_context>
chip_gen: v5e
topology: v5e:2x2
jax: 0.10.0
libtpu: 0.0.40
codegen_flags: <defaults>
</compile_context>

<pallas_src>
import functools
import math

import jax
import jax.numpy as jnp
from jax.experimental import pallas as pl
from jax.experimental.pallas import tpu as pltpu


_POFF = 8          # sublane-aligned column offset of the interior inside the padded scratch
_MiB = 1024 * 1024


# ----------------------------------------------------------------------------- kernels


def _upsample_kernel(x_ref, o_ref):
    """Nearest 2x upsample of one (batch, row-tile) block, NHWC layout.

    The W-doubling is a lane-axis duplicate: the output block is (1, 2*TH, W, 2*C), which
    occupies exactly the same memory as (1, 2*TH, 2*W, C); the wrapper reshapes it back.
    This keeps the interleave off the XLU (no cross-sublane shuffle) and doubles store
    lane density -- critical on v5e's single vector-store slot.
    """
    x = x_ref[0]                                   # (TH, W, C)
    xw = jnp.concatenate([x, x], axis=-1)          # (TH, W, 2C): memory == W interleave
    o_ref[0] = jnp.repeat(xw, 2, axis=0)           # H duplicate (major axis), one bulk store


def _upsample_conv_kernel(x_ref, xtop_ref, xbot_ref, w_ref, b_ref, o_ref, pad_ref,
                          *, mxu_dtype, im2col):
    """Nearest 2x upsample + 3x3 SAME conv of one (batch, row-tile) block, NHWC layout."""
    # x_ref:    (1, TH, W, Cin)   input row tile
    # xtop_ref: (1, 1,  W, Cin)   input row just above the tile (ignored on the first tile)
    # xbot_ref: (1, 1,  W, Cin)   input row just below the tile (ignored on the last tile)
    # w_ref:    (9*Cin, Cout)     HWIO conv weights flattened as (ky, kx, cin) rows
    # b_ref:    (1, Cout)         bias (f32)
    # o_ref:    (1, 2*TH, 2*W, Cout)
    # pad_ref:  VMEM scratch (2*TH + 2, 2*W + 2*_POFF, Cin) in the INPUT dtype.
    #   NOTE: every row/column the conv reads (interior, 2 halo rows, 2 border columns) is
    #   rewritten on EVERY grid step; widening the read window (e.g. a 5x5 kernel) without
    #   widening the rewritten region would silently leak stale data from a previous tile.
    _, TH, W, Cin = x_ref.shape
    Cout = o_ref.shape[-1]
    THo, Wo = 2 * TH, 2 * W

    i = pl.program_id(1)
    last = pl.num_programs(1) - 1

    # --- nearest 2x upsample: vectorized interleave, ONE sublane-aligned bulk store ---
    up = jnp.repeat(jnp.repeat(x_ref[0], 2, axis=0), 2, axis=1)        # (THo, Wo, Cin)
    pad_ref[1:THo + 1, _POFF:_POFF + Wo, :] = up

    # --- halo rows (the upsampled row above / below the tile); zeros at the image border.
    #     pl.when-gated: non-border tiles skip the zero fill, border tiles skip the repeat.
    @pl.when(i > 0)
    def _():
        pad_ref[0:1, _POFF:_POFF + Wo, :] = jnp.repeat(xtop_ref[0, 0], 2, axis=0)[None]

    @pl.when(i == 0)
    def _():
        pad_ref[0:1, _POFF:_POFF + Wo, :] = jnp.zeros((1, Wo, Cin), pad_ref.dtype)

    @pl.when(i < last)
    def _():
        pad_ref[THo + 1:THo + 2, _POFF:_POFF + Wo, :] = (
            jnp.repeat(xbot_ref[0, 0], 2, axis=0)[None])

    @pl.when(i == last)
    def _():
        pad_ref[THo + 1:THo + 2, _POFF:_POFF + Wo, :] = (
            jnp.zeros((1, Wo, Cin), pad_ref.dtype))

    # --- zero ONLY the 1-px left/right border columns (every step -> megacore-safe) ---
    zcol = jnp.zeros((THo + 2, 1, Cin), pad_ref.dtype)
    pad_ref[:, _POFF - 1:_POFF, :] = zcol
    pad_ref[:, _POFF + Wo:_POFF + Wo + 1, :] = zcol

    R = THo * Wo
    if im2col:
        # Small Cin: fuse all 9 taps into a single im2col matmul (K = 9*Cin) so the MXU K
        # dim stays filled.  The 3 dx-shifted copies are built once, reused across dy.
        shifted = [pad_ref[:, _POFF - 1 + dx:_POFF - 1 + dx + Wo, :] for dx in range(3)]
        patches = jnp.concatenate(
            [shifted[dx][dy:dy + THo].reshape(R, Cin)
             for dy in range(3) for dx in range(3)], axis=-1).astype(mxu_dtype)
        acc = jnp.dot(patches, w_ref[...], preferred_element_type=jnp.float32)
    else:
        # Large Cin (>= 128): no im2col / shifted-copy temporaries.  Nine accumulating
        # dots, one per (dy, dx) tap, each reading its (THo, Wo, Cin) window directly.
        # K = Cin already fills the MXU K dim; accumulation stays f32.
        acc = jnp.zeros((R, Cout), jnp.float32)
        for dy in range(3):
            for dx in range(3):
                tap = pad_ref[dy:dy + THo, _POFF - 1 + dx:_POFF - 1 + dx + Wo, :]
                k0 = (dy * 3 + dx) * Cin
                acc = acc + jnp.dot(tap.reshape(R, Cin).astype(mxu_dtype),
                                    w_ref[k0:k0 + Cin, :],
                                    preferred_element_type=jnp.float32)

    acc = acc + b_ref[...]                                   # f32 bias add
    o_ref[0] = acc.reshape(THo, Wo, Cout).astype(o_ref.dtype)


# ----------------------------------------------------------------------------- sizing


def _vmem_capacity_bytes():
    try:
        cap = int(getattr(pltpu.get_tpu_info(), "vmem_capacity_bytes", 0))
        if cap > 0:
            return cap
    except Exception:
        pass
    return 128 * _MiB


def _block_budget_bytes():
    # ~80 MiB of blocks on 128-MiB parts (v5e/v6e), ~40 MiB on 64-MiB parts (v7x, per TC).
    return int(0.62 * _vmem_capacity_bytes())


def _vmem_limit(est_bytes):
    cap = _vmem_capacity_bytes()
    ceiling = max(32 * _MiB, cap - 16 * _MiB)   # headroom for Mosaic internal scratch
    return int(min(ceiling, max(32 * _MiB, int(1.5 * est_bytes))))


def _plain_vmem_bytes(th, W, C, itemsize):
    tho = 2 * th
    return (2 * th * W * C            # double-buffered input blocks
            + 2 * tho * W * 2 * C     # double-buffered lane-dense output blocks
            + 2 * tho * W * 2 * C     # interleave temporaries (upper bound)
            ) * itemsize


def _conv_vmem_bytes(th, W, Cin, Cout, itemsize, mxu_itemsize, im2col):
    tho, wo = 2 * th, 2 * W
    r = tho * wo
    total = 2 * th * W * Cin * itemsize                       # input blocks (double-buffered)
    total += 2 * 2 * W * Cin * itemsize                       # halo rows (double-buffered)
    total += 2 * tho * wo * Cout * itemsize                   # output blocks (double-buffered)
    total += 2 * (9 * Cin * Cout * mxu_itemsize + Cout * 4)   # weights + bias
    total += (tho + 2) * (wo + 2 * _POFF) * Cin * itemsize    # padded scratch (input dtype)
    # live temporaries: max over the upsample phase and the matmul phase (not flat sum)
    ups_phase = tho * wo * Cin * itemsize
    if im2col:
        mm_phase = (3 * (tho + 2) * wo * Cin * itemsize       # dx-shifted copies
                    + r * 9 * Cin * mxu_itemsize              # im2col patches
                    + r * Cout * 4)                           # f32 accumulator
    else:
        mm_phase = 2 * r * Cin * mxu_itemsize + r * Cout * 4  # per-tap slice + f32 acc
    total += max(ups_phase, mm_phase)
    return total


def _pick_row_tile(H, N, est_bytes_fn, budget):
    cands = [d for d in range(H, 0, -1) if H % d == 0]
    fitting = [d for d in cands if est_bytes_fn(d) <= budget]
    if not fitting:
        return 1
    # Prefer >= 2 total grid steps (keeps both v7x TensorCores busy); th = H is fine when
    # the batch dimension already provides that.
    for d in fitting:
        if N * (H // d) >= 2:
            return d
    return fitting[0]


# ----------------------------------------------------------------------------- wrappers


def upsample_forward_nhwc(x, with_conv, w_hwio=None, b=None, row_tile=None,
                          mxu_dtype=None, im2col_threshold=128):
    """Pallas Upsample.forward in NHWC layout.  x: (N, H, W, C).

    mxu_dtype: dtype fed to the MXU for the conv (default: x.dtype).  Pass jnp.bfloat16 for
    2-4x MXU throughput when reduced-precision multiplies are acceptable; accumulation and
    bias stay f32 either way.
    """
    N, H, W, C = x.shape
    Ho, Wo = 2 * H, 2 * W
    itemsize = jnp.dtype(x.dtype).itemsize
    budget = _block_budget_bytes()

    if with_conv:
        Cout = w_hwio.shape[-1]
        mxu_dt = jnp.dtype(x.dtype) if mxu_dtype is None else jnp.dtype(mxu_dtype)
        im2col = C < im2col_threshold
        est_fn = lambda t: _conv_vmem_bytes(t, W, C, Cout, itemsize, mxu_dt.itemsize, im2col)
        th = row_tile if row_tile is not None else _pick_row_tile(H, N, est_fn, budget)
        assert H % th == 0, "row_tile must divide H"
        THo = 2 * th
        est = est_fn(th)

        w_flat = w_hwio.reshape(9 * C, Cout).astype(mxu_dt)   # (ky, kx, cin) rows
        b2 = b.reshape(1, Cout).astype(jnp.float32)
        kernel = functools.partial(_upsample_conv_kernel, mxu_dtype=mxu_dt, im2col=im2col)

        out = pl.pallas_call(
            kernel,
            out_shape=jax.ShapeDtypeStruct((N, Ho, Wo, Cout), x.dtype),
            grid=(N, H // th),
            in_specs=[
                pl.BlockSpec((1, th, W, C), lambda n, i: (n, i, 0, 0)),
                pl.BlockSpec((1, 1, W, C),
                             lambda n, i: (n, jnp.maximum(i * th - 1, 0), 0, 0)),
                pl.BlockSpec((1, 1, W, C),
                             lambda n, i: (n, jnp.minimum((i + 1) * th, H - 1), 0, 0)),
                pl.BlockSpec((9 * C, Cout), lambda n, i: (0, 0)),
                pl.BlockSpec((1, Cout), lambda n, i: (0, 0)),
            ],
            out_specs=pl.BlockSpec((1, THo, Wo, Cout), lambda n, i: (n, i, 0, 0)),
            scratch_shapes=[pltpu.VMEM((THo + 2, Wo + 2 * _POFF, C), x.dtype)],
            compiler_params=pltpu.CompilerParams(
                dimension_semantics=("parallel", "parallel"),
                vmem_limit_bytes=_vmem_limit(est)),
        )(x, x, x, w_flat, b2)
        return out

    # -------- plain nearest-2x path (lane-dense stores) --------
    est_fn = lambda t: _plain_vmem_bytes(t, W, C, itemsize)
    th = row_tile if row_tile is not None else _pick_row_tile(H, N, est_fn, budget)
    assert H % th == 0, "row_tile must divide H"
    THo = 2 * th
    est = est_fn(th)

    out = pl.pallas_call(
        _upsample_kernel,
        # (N, Ho, W, 2C) has the exact same memory layout as (N, Ho, 2W, C)
        out_shape=jax.ShapeDtypeStruct((N, Ho, W, 2 * C), x.dtype),
        grid=(N, H // th),
        in_specs=[pl.BlockSpec((1, th, W, C), lambda n, i: (n, i, 0, 0))],
        out_specs=pl.BlockSpec((1, THo, W, 2 * C), lambda n, i: (n, i, 0, 0)),
        compiler_params=pltpu.CompilerParams(
            dimension_semantics=("parallel", "parallel"),
            vmem_limit_bytes=_vmem_limit(est)),
    )(x)
    return out.reshape(N, Ho, Wo, C)        # free (row-major) reshape back to NHWC


def upsample_forward(x_nchw, with_conv, w_hwio=None, b=None, **kwargs):
    """PyTorch-layout (NCHW) adapter.  If your network is NHWC, call upsample_forward_nhwc
    directly — the two transposes here are pure HBM overhead for this memory-bound op."""
    x = jnp.transpose(x_nchw, (0, 2, 3, 1))                  # NCHW -> NHWC
    y = upsample_forward_nhwc(x, with_conv, w_hwio, b, **kwargs)
    return jnp.transpose(y, (0, 3, 1, 2))                    # NHWC -> NCHW


# ----------------------------------------------------------------------------- test


if __name__ == "__main__":
    key = jax.random.PRNGKey(0)
    kx, kw, kb = jax.random.split(key, 3)

    # small shapes consistent with the module: NCHW input, in_channels == out_channels
    N, C, H, W = 2, 4, 16, 16
    x = jax.random.normal(kx, (N, C, H, W), dtype=jnp.float32)

    # deterministic Conv2d(C, C, 3, padding=1) params (PyTorch-style init)
    fan_in = C * 3 * 3
    bound = 1.0 / math.sqrt(fan_in)
    w_oihw = jax.random.uniform(kw, (C, C, 3, 3), minval=-bound, maxval=bound,
                                dtype=jnp.float32)
    b = jax.random.uniform(kb, (C,), minval=-bound, maxval=bound, dtype=jnp.float32)
    w_hwio = jnp.transpose(w_oihw, (2, 3, 1, 0))             # OIHW -> HWIO

    # pure-JAX reference (torch.nn.functional.interpolate(mode='nearest') + Conv2d)
    up_ref = jnp.repeat(jnp.repeat(x, 2, axis=2), 2, axis=3)
    conv_ref = jax.lax.conv_general_dilated(
        up_ref, w_oihw, window_strides=(1, 1), padding=((1, 1), (1, 1)),
        dimension_numbers=("NCHW", "OIHW", "NCHW")) + b[None, :, None, None]

    # plain path (lane-dense stores)
    y_plain = jax.block_until_ready(upsample_forward(x, False))
    assert y_plain.shape == (N, C, 2 * H, 2 * W)
    assert jnp.allclose(y_plain, up_ref, atol=1e-6), "upsample mismatch"

    # conv path, fused im2col branch (Cin < 128), auto row tile (full image, N>=2)
    y_conv = jax.block_until_ready(upsample_forward(x, True, w_hwio, b))
    assert y_conv.shape == (N, C, 2 * H, 2 * W)
    assert jnp.allclose(y_conv, conv_ref, atol=2e-4, rtol=2e-4), "upsample+conv mismatch"

    # conv path with explicit row tiling (exercises the halo logic)
    y_conv_t = jax.block_until_ready(upsample_forward(x, True, w_hwio, b, row_tile=4))
    assert jnp.allclose(y_conv_t, conv_ref, atol=2e-4, rtol=2e-4), "tiled conv mismatch"

    # conv path forced onto the per-tap (large-Cin) branch to validate it at small shapes
    y_conv_pt = jax.block_until_ready(
        upsample_forward(x, True, w_hwio, b, row_tile=4, im2col_threshold=1))
    assert jnp.allclose(y_conv_pt, conv_ref, atol=2e-4, rtol=2e-4), "per-tap conv mismatch"

    # conv path with bf16 MXU inputs (f32 accumulation): explicit reduced-precision option
    y_conv_bf16 = jax.block_until_ready(
        upsample_forward(x, True, w_hwio, b, mxu_dtype=jnp.bfloat16))
    assert jnp.allclose(y_conv_bf16, conv_ref, atol=3e-2, rtol=3e-2), "bf16 conv mismatch"

    print("KERNEL_OK")
</pallas_src>

<mosaic_0001>
module attributes {stable_mosaic.version = 11 : i64} {
  func.func @_upsample_kernel(%arg0: i32, %arg1: i32, %arg2: memref<1x16x16x4xf32, #tpu.memory_space<vmem>>, %arg3: memref<1x32x16x8xf32, #tpu.memory_space<vmem>>) attributes {dimension_semantics = [#tpu.dimension_semantics<parallel>, #tpu.dimension_semantics<parallel>], iteration_bounds = array<i64: 2, 1>, scalar_prefetch = 0 : i64, scratch_operands = 0 : i64, tpu.core_type = #tpu.core_type<tc>, window_params = [{transform_indices = @transform_0, window_bounds = array<i64: 1, 16, 16, 4>}, {transform_indices = @transform_1, window_bounds = array<i64: 1, 32, 16, 8>}]} {
    %c0 = arith.constant 0 : index
    %c0_0 = arith.constant 0 : index
    %c0_1 = arith.constant 0 : index
    %c0_2 = arith.constant 0 : index
    %0 = vector.load %arg2[%c0, %c0_0, %c0_1, %c0_2] : memref<1x16x16x4xf32, #tpu.memory_space<vmem>>, vector<1x16x16x4xf32>
    %1 = vector.shape_cast %0 : vector<1x16x16x4xf32> to vector<16x16x4xf32>
    %2 = tpu.concatenate %1, %1 in 2 : vector<16x16x4xf32>, vector<16x16x4xf32> -> vector<16x16x8xf32>
    %3 = vector.shape_cast %2 : vector<16x16x8xf32> to vector<16x1x16x8xf32>
    %4 = vector.broadcast %3 : vector<16x1x16x8xf32> to vector<16x2x16x8xf32>
    %5 = vector.shape_cast %4 : vector<16x2x16x8xf32> to vector<32x16x8xf32>
    %c0_3 = arith.constant 0 : index
    %c0_4 = arith.constant 0 : index
    %c0_5 = arith.constant 0 : index
    %c0_6 = arith.constant 0 : index
    %6 = vector.load %arg3[%c0_3, %c0_4, %c0_5, %c0_6] : memref<1x32x16x8xf32, #tpu.memory_space<vmem>>, vector<1x32x16x8xf32>
    %7 = vector.shape_cast %6 : vector<1x32x16x8xf32> to vector<32x16x8xf32>
    %8 = vector.shape_cast %5 : vector<32x16x8xf32> to vector<1x32x16x8xf32>
    tpu.vector_store %arg3[%c0_3, %c0_4, %c0_5, %c0_6], %8 {strides = array<i32>} : memref<1x32x16x8xf32, #tpu.memory_space<vmem>>, vector<1x32x16x8xf32>,
    return
  }
  func.func @transform_0(%arg0: i32, %arg1: i32) -> (i32, i32, i32, i32) {
    %c0_i32 = arith.constant 0 : i32
    %c0_i32_0 = arith.constant 0 : i32
    %c0_i32_1 = arith.constant 0 : i32
    return %arg0, %arg1, %c0_i32, %c0_i32_0 : i32, i32, i32, i32
  }
  func.func @transform_1(%arg0: i32, %arg1: i32) -> (i32, i32, i32, i32) {
    %c0_i32 = arith.constant 0 : i32
    %c0_i32_0 = arith.constant 0 : i32
    %c0_i32_1 = arith.constant 0 : i32
    return %arg0, %arg1, %c0_i32, %c0_i32_0 : i32, i32, i32, i32
  }
}

</mosaic_0001>

<bundles_post_ra>
// kernel: tpu_custom_call.1
= control target key start
LH: loop header
LB: loop body
LE: loop exit
PB: predicated region body
PF: predicated region fallthrough
CT: control target
= control target key end

     0   :  { %s588_s6 = smov 0   ;;  %s590_s7 = smov 0   ;;  %s977_s0 = inlined_call_operand.vmem [shape: f32[2,16,16,4], index: 0, kind: input, shape index: {}]   ;;  %s978_s1 = inlined_call_operand.vmem [shape: f32[2,32,16,8], index: 1, kind: output, shape index: {}]  }
   0x1   :  { %s592_s8 = smov 0  }
   0x2 LB: > { %s23_s9 = sadd.s32 1, %s571_s7  ;;  %p519_p0 = scmp.ge.s32.totalorder %s575_s8, 1  ;;  %s575_s8 = sphi %s592_s8, %s11_s8   ;;  %s571_s7 = sphi %s590_s7, %s980_s7   ;;  %s567_s6 = sphi %s588_s6, %s979_s6  }
   0x3   : > { %p25_p1 = scmp.ge.s32.totalorder %s23_s9, 2  ;;  %p109_p2 = scmp.lt.s32.totalorder %s575_s8, 3 }
   0x5   : > { %s982_s9 = smov (%p25_p1, %s23_s9), 0  ;;  %p110_p3 = pnand %p519_p0, %p109_p2 }
   0x6   : > { %p140_p4 = scmp.lt.s32.totalorder (!%p110_p3), %s567_s6, 1  ;;  %s577_s14 = smov (!%p110_p3), 4  }
   0x7   : > { %113 = sbr.rel (%p110_p3) target bundleno = 216 (0xd8), region = 24 }
   0xc   : > { %s984_s6 = smov (!%p140_p4, %s567_s6), 1  ;;  %vm321_vm0 = vcmask 31744   ;;  %vm354_vm1 = vcmask 64512  }
   0xd   : > { %s526_s10 = sshll.u32 %s984_s6, 8  ;;  %s527_s15 = sshll.u32 %s984_s6, 9 }
   0xe   : > { %s612_s13 = scalar_lea.vmem %s977_s0, %s526_s10  ;;  %s775_s18 = scalar_lea.vmem %s978_s1, %s527_s15 }
   0xf   : > { %v615_v0 = vld [vmem:[%s612_s13 + $0x10] sm:$0xff]  ;;  %v618_v1 = vld [vmem:[%s612_s13] sm:$0xff]  ;;  %v630_v3 = vld [vmem:[%s612_s13 + $0x18] sm:$0xff] }
  0x10   : > { %229 = vrot.lane.b32.xlu1 %v615_v0, %s577_s14  ;;  %225 = vrot.lane.b32.xlu0 %v618_v1, %s577_s14  ;;  %v625_v2 = vld [vmem:[%s612_s13 + $0x20] sm:$0xff]  ;;  %v633_v4 = vld [vmem:[%s612_s13 + $0x8] sm:$0xff] }
  0x11   : > { %233 = vrot.lane.b32.xlu2 %v625_v2, %s577_s14  ;;  %v640_v5 = vld [vmem:[%s612_s13 + $0x28] sm:$0xff]  ;;  %v645_v6 = vld [vmem:[%s612_s13 + $0x38] sm:$0xff]  ;;  %v648_v7 = vld [vmem:[%s612_s13 + $0x30] sm:$0xff] }
  0x12   : > { %v169_v8 = vld [vmem:[%s612_s13 + $0x40] sm:$0xff]  ;;  %v657_v9 = vld [vmem:[%s612_s13 + $0x50] sm:$0xff]  ;;  %v660_v10 = vld [vmem:[%s612_s13 + $0x48] sm:$0xff] }
  0x13   : > { %v667_v11 = vld [vmem:[%s612_s13 + $0x58] sm:$0xff]  ;;  %v672_v12 = vld [vmem:[%s612_s13 + $0x68] sm:$0xff]  ;;  %v675_v13 = vld [vmem:[%s612_s13 + $0x60] sm:$0xff] }
  0x14   : > { %v682_v14 = vld [vmem:[%s612_s13 + $0x70] sm:$0xff]  ;;  %v687_v15 = vld [vmem:[%s612_s13 + $0x80] sm:$0xff]  ;;  %v690_v16 = vld [vmem:[%s612_s13 + $0x78] sm:$0xff] }
  0x15   : > { %v697_v17 = vld [vmem:[%s612_s13 + $0x88] sm:$0xff]  ;;  %v702_v18 = vld [vmem:[%s612_s13 + $0x98] sm:$0xff]  ;;  %v705_v19 = vld [vmem:[%s612_s13 + $0x90] sm:$0xff] }
  0x16   : > { %v712_v20 = vld [vmem:[%s612_s13 + $0xa0] sm:$0xff]  ;;  %v717_v21 = vld [vmem:[%s612_s13 + $0xb0] sm:$0xff]  ;;  %v720_v22 = vld [vmem:[%s612_s13 + $0xa8] sm:$0xff] }
  0x17   : > { %v727_v23 = vld [vmem:[%s612_s13 + $0xb8] sm:$0xff]  ;;  %v732_v24 = vld [vmem:[%s612_s13 + $0xc8] sm:$0xff]  ;;  %v735_v25 = vld [vmem:[%s612_s13 + $0xc0] sm:$0xff] }
  0x18   : > { %231 = vrot.lane.b32.xlu1 %v630_v3, %s577_s14  ;;  %227 = vrot.lane.b32.xlu0 %v633_v4, %s577_s14  ;;  %v742_v26 = vld [vmem:[%s612_s13 + $0xd0] sm:$0xff]  ;;  %v747_v27 = vld [vmem:[%s612_s13 + $0xe0] sm:$0xff] }
  0x19   : > { %235 = vrot.lane.b32.xlu2 %v640_v5, %s577_s14  ;;  %v750_v28 = vld [vmem:[%s612_s13 + $0xd8] sm:$0xff]  ;;  %v757_v29 = vld [vmem:[%s612_s13 + $0xe8] sm:$0xff]  ;;  %v765_v31 = vld [vmem:[%s612_s13 + $0xf0] sm:$0xff] }
  0x1a   : > { %v762_v30 = vld [vmem:[%s612_s13 + $0xf8] sm:$0xff] }
  0x20   : > { %239 = vrot.lane.b32.xlu1 %v645_v6, %s577_s14  ;;  %237 = vrot.lane.b32.xlu0 %v648_v7, %s577_s14 }
  0x21   : > { %241 = vrot.lane.b32.xlu2 %v169_v8, %s577_s14 }
  0x28   : > { %245 = vrot.lane.b32.xlu1 %v657_v9, %s577_s14  ;;  %243 = vrot.lane.b32.xlu0 %v660_v10, %s577_s14 }
  0x29   : > { %247 = vrot.lane.b32.xlu2 %v667_v11, %s577_s14 }
  0x30   : > { %251 = vrot.lane.b32.xlu1 %v672_v12, %s577_s14  ;;  %249 = vrot.lane.b32.xlu0 %v675_v13, %s577_s14 }
  0x31   : > { %253 = vrot.lane.b32.xlu2 %v682_v14, %s577_s14 }
  0x38   : > { %257 = vrot.lane.b32.xlu1 %v687_v15, %s577_s14  ;;  %255 = vrot.lane.b32.xlu0 %v690_v16, %s577_s14 }
  0x39   : > { %259 = vrot.lane.b32.xlu2 %v697_v17, %s577_s14 }
  0x40   : > { %263 = vrot.lane.b32.xlu1 %v702_v18, %s577_s14  ;;  %261 = vrot.lane.b32.xlu0 %v705_v19, %s577_s14 }
  0x41   : > { %265 = vrot.lane.b32.xlu2 %v712_v20, %s577_s14 }
  0x48   : > { %269 = vrot.lane.b32.xlu1 %v717_v21, %s577_s14  ;;  %267 = vrot.lane.b32.xlu0 %v720_v22, %s577_s14 }
  0x49   : > { %271 = vrot.lane.b32.xlu2 %v727_v23, %s577_s14 }
  0x50   : > { %275 = vrot.lane.b32.xlu1 %v732_v24, %s577_s14  ;;  %273 = vrot.lane.b32.xlu0 %v735_v25, %s577_s14 }
  0x51   : > { %277 = vrot.lane.b32.xlu2 %v742_v26, %s577_s14 }
  0x58   : > { %281 = vrot.lane.b32.xlu1 %v747_v27, %s577_s14  ;;  %279 = vrot.lane.b32.xlu0 %v750_v28, %s577_s14 }
  0x59   : > { %283 = vrot.lane.b32.xlu2 %v757_v29, %s577_s14 }
  0x60   : > { %287 = vrot.lane.b32.xlu1 %v762_v30, %s577_s14  ;;  %285 = vrot.lane.b32.xlu0 %v765_v31, %s577_s14 }
  0x6b   : > { %v234_v32 = vpop.permute.xlu2 %233 }
  0x6c   : > { %v326_v33 = vsel %vm321_vm0, %v625_v2, %v234_v32 }
  0x6d   : > { %363 = vst.msk [vmem:[%s775_s18 + $0x40] sm:$0xff] %vm354_vm1, %v326_v33 }
  0x6e   : > { %365 = vst.msk [vmem:[%s775_s18 + $0x50] sm:$0xff] %vm354_vm1, %v326_v33 }
  0x73   : > { %v236_v34 = vpop.permute.xlu2 %235 }
  0x74   : > { %v327_v35 = vsel %vm321_vm0, %v640_v5, %v236_v34 }
  0x75   : > { %364 = vst.msk [vmem:[%s775_s18 + $0x48] sm:$0xff] %vm354_vm1, %v327_v35 }
  0x76   : > { %366 = vst.msk [vmem:[%s775_s18 + $0x58] sm:$0xff] %vm354_vm1, %v327_v35 }
  0x7b   : > { %v242_v36 = vpop.permute.xlu2 %241 }
  0x7c   : > { %v330_v37 = vsel %vm321_vm0, %v169_v8, %v242_v36 }
  0x7d   : > { %371 = vst.msk [vmem:[%s775_s18 + $0x80] sm:$0xff] %vm354_vm1, %v330_v37 }
  0x7e   : > { %373 = vst.msk [vmem:[%s775_s18 + $0x90] sm:$0xff] %vm354_vm1, %v330_v37 }
  0x82   : > { %v230_v38 = vpop.permute.xlu1 %229  ;;  %v226_v39 = vpop.permute.xlu0 %225 }
  0x83   : > { %v324_v40 = vsel %vm321_vm0, %v615_v0, %v230_v38  ;;  %v322_v41 = vsel %vm321_vm0, %v618_v1, %v226_v39  ;;  %v248_v42 = vpop.permute.xlu2 %247 }
  0x84   : > { %359 = vst.msk [vmem:[%s775_s18 + $0x20] sm:$0xff] %vm354_vm1, %v324_v40  ;;  %v333_v43 = vsel %vm321_vm0, %v667_v11, %v248_v42 }
  0x85   : > { %361 = vst.msk [vmem:[%s775_s18 + $0x30] sm:$0xff] %vm354_vm1, %v324_v40 }
  0x86   : > { %355 = vst.msk [vmem:[%s775_s18] sm:$0xff] %vm354_vm1, %v322_v41 }
  0x87   : > { %357 = vst.msk [vmem:[%s775_s18 + $0x10] sm:$0xff] %vm354_vm1, %v322_v41 }
  0x88   : > { %376 = vst.msk [vmem:[%s775_s18 + $0xa8] sm:$0xff] %vm354_vm1, %v333_v43 }
  0x89   : > { %378 = vst.msk [vmem:[%s775_s18 + $0xb8] sm:$0xff] %vm354_vm1, %v333_v43 }
  0x8a   : > { %v232_v44 = vpop.permute.xlu1 %231  ;;  %v228_v45 = vpop.permute.xlu0 %227 }
  0x8b   : > { %v325_v46 = vsel %vm321_vm0, %v630_v3, %v232_v44  ;;  %v323_v47 = vsel %vm321_vm0, %v633_v4, %v228_v45  ;;  %v254_v48 = vpop.permute.xlu2 %253 }
  0x8c   : > { %360 = vst.msk [vmem:[%s775_s18 + $0x28] sm:$0xff] %vm354_vm1, %v325_v46  ;;  %v336_v49 = vsel %vm321_vm0, %v682_v14, %v254_v48 }
  0x8d   : > { %362 = vst.msk [vmem:[%s775_s18 + $0x38] sm:$0xff] %vm354_vm1, %v325_v46 }
  0x8e   : > { %356 = vst.msk [vmem:[%s775_s18 + $0x8] sm:$0xff] %vm354_vm1, %v323_v47 }
  0x8f   : > { %358 = vst.msk [vmem:[%s775_s18 + $0x18] sm:$0xff] %vm354_vm1, %v323_v47 }
  0x90   : > { %383 = vst.msk [vmem:[%s775_s18 + $0xe0] sm:$0xff] %vm354_vm1, %v336_v49 }
  0x91   : > { %385 = vst.msk [vmem:[%s775_s18 + $0xf0] sm:$0xff] %vm354_vm1, %v336_v49 }
  0x92   : > { %v240_v50 = vpop.permute.xlu1 %239  ;;  %v238_v51 = vpop.permute.xlu0 %237 }
  0x93   : > { %v329_v52 = vsel %vm321_vm0, %v645_v6, %v240_v50  ;;  %v328_v53 = vsel %vm321_vm0, %v648_v7, %v238_v51  ;;  %v260_v54 = vpop.permute.xlu2 %259 }
  0x94   : > { %368 = vst.msk [vmem:[%s775_s18 + $0x68] sm:$0xff] %vm354_vm1, %v329_v52  ;;  %v339_v55 = vsel %vm321_vm0, %v697_v17, %v260_v54 }
  0x95   : > { %370 = vst.msk [vmem:[%s775_s18 + $0x78] sm:$0xff] %vm354_vm1, %v329_v52 }
  0x96   : > { %367 = vst.msk [vmem:[%s775_s18 + $0x60] sm:$0xff] %vm354_vm1, %v328_v53 }
  0x97   : > { %369 = vst.msk [vmem:[%s775_s18 + $0x70] sm:$0xff] %vm354_vm1, %v328_v53 }
  0x98   : > { %388 = vst.msk [vmem:[%s775_s18 + $0x108] sm:$0xff] %vm354_vm1, %v339_v55 }
  0x99   : > { %390 = vst.msk [vmem:[%s775_s18 + $0x118] sm:$0xff] %vm354_vm1, %v339_v55 }
  0x9a   : > { %v246_v56 = vpop.permute.xlu1 %245  ;;  %v244_v57 = vpop.permute.xlu0 %243 }
  0x9b   : > { %v332_v58 = vsel %vm321_vm0, %v657_v9, %v246_v56  ;;  %v331_v59 = vsel %vm321_vm0, %v660_v10, %v244_v57  ;;  %v266_v60 = vpop.permute.xlu2 %265 }
  0x9c   : > { %375 = vst.msk [vmem:[%s775_s18 + $0xa0] sm:$0xff] %vm354_vm1, %v332_v58  ;;  %v342_v61 = vsel %vm321_vm0, %v712_v20, %v266_v60 }
  0x9d   : > { %377 = vst.msk [vmem:[%s775_s18 + $0xb0] sm:$0xff] %vm354_vm1, %v332_v58 }
  0x9e   : > { %372 = vst.msk [vmem:[%s775_s18 + $0x88] sm:$0xff] %vm354_vm1, %v331_v59 }
  0x9f   : > { %374 = vst.msk [vmem:[%s775_s18 + $0x98] sm:$0xff] %vm354_vm1, %v331_v59 }
  0xa0   : > { %395 = vst.msk [vmem:[%s775_s18 + $0x140] sm:$0xff] %vm354_vm1, %v342_v61 }
  0xa1   : > { %397 = vst.msk [vmem:[%s775_s18 + $0x150] sm:$0xff] %vm354_vm1, %v342_v61 }
  0xa2   : > { %v252_v62 = vpop.permute.xlu1 %251  ;;  %v250_v63 = vpop.permute.xlu0 %249 }
  0xa3   : > { %v335_v0 = vsel %vm321_vm0, %v672_v12, %v252_v62  ;;  %v334_v1 = vsel %vm321_vm0, %v675_v13, %v250_v63  ;;  %v272_v2 = vpop.permute.xlu2 %271 }
  0xa4   : > { %380 = vst.msk [vmem:[%s775_s18 + $0xc8] sm:$0xff] %vm354_vm1, %v335_v0  ;;  %v345_v3 = vsel %vm321_vm0, %v727_v23, %v272_v2 }
  0xa5   : > { %382 = vst.msk [vmem:[%s775_s18 + $0xd8] sm:$0xff] %vm354_vm1, %v335_v0 }
  0xa6   : > { %379 = vst.msk [vmem:[%s775_s18 + $0xc0] sm:$0xff] %vm354_vm1, %v334_v1 }
  0xa7   : > { %381 = vst.msk [vmem:[%s775_s18 + $0xd0] sm:$0xff] %vm354_vm1, %v334_v1 }
  0xa8   : > { %400 = vst.msk [vmem:[%s775_s18 + $0x168] sm:$0xff] %vm354_vm1, %v345_v3 }
  0xa9   : > { %402 = vst.msk [vmem:[%s775_s18 + $0x178] sm:$0xff] %vm354_vm1, %v345_v3 }
  0xaa   : > { %v258_v4 = vpop.permute.xlu1 %257  ;;  %v256_v5 = vpop.permute.xlu0 %255 }
  0xab   : > { %v338_v6 = vsel %vm321_vm0, %v687_v15, %v258_v4  ;;  %v337_v7 = vsel %vm321_vm0, %v690_v16, %v256_v5  ;;  %v278_v8 = vpop.permute.xlu2 %277 }
  0xac   : > { %387 = vst.msk [vmem:[%s775_s18 + $0x100] sm:$0xff] %vm354_vm1, %v338_v6  ;;  %v348_v9 = vsel %vm321_vm0, %v742_v26, %v278_v8 }
  0xad   : > { %389 = vst.msk [vmem:[%s775_s18 + $0x110] sm:$0xff] %vm354_vm1, %v338_v6 }
  0xae   : > { %384 = vst.msk [vmem:[%s775_s18 + $0xe8] sm:$0xff] %vm354_vm1, %v337_v7 }
  0xaf   : > { %386 = vst.msk [vmem:[%s775_s18 + $0xf8] sm:$0xff] %vm354_vm1, %v337_v7 }
  0xb0   : > { %407 = vst.msk [vmem:[%s775_s18 + $0x1a0] sm:$0xff] %vm354_vm1, %v348_v9 }
  0xb1   : > { %409 = vst.msk [vmem:[%s775_s18 + $0x1b0] sm:$0xff] %vm354_vm1, %v348_v9 }
  0xb2   : > { %v264_v10 = vpop.permute.xlu1 %263  ;;  %v262_v11 = vpop.permute.xlu0 %261 }
  0xb3   : > { %v341_v12 = vsel %vm321_vm0, %v702_v18, %v264_v10  ;;  %v340_v13 = vsel %vm321_vm0, %v705_v19, %v262_v11  ;;  %v284_v14 = vpop.permute.xlu2 %283 }
  0xb4   : > { %392 = vst.msk [vmem:[%s775_s18 + $0x128] sm:$0xff] %vm354_vm1, %v341_v12  ;;  %v351_v15 = vsel %vm321_vm0, %v757_v29, %v284_v14 }
  0xb5   : > { %394 = vst.msk [vmem:[%s775_s18 + $0x138] sm:$0xff] %vm354_vm1, %v341_v12 }
  0xb6   : > { %391 = vst.msk [vmem:[%s775_s18 + $0x120] sm:$0xff] %vm354_vm1, %v340_v13 }
  0xb7   : > { %393 = vst.msk [vmem:[%s775_s18 + $0x130] sm:$0xff] %vm354_vm1, %v340_v13 }
  0xb8   : > { %412 = vst.msk [vmem:[%s775_s18 + $0x1c8] sm:$0xff] %vm354_vm1, %v351_v15 }
  0xb9   : > { %414 = vst.msk [vmem:[%s775_s18 + $0x1d8] sm:$0xff] %vm354_vm1, %v351_v15 }
  0xba   : > { %v270_v16 = vpop.permute.xlu1 %269  ;;  %v268_v17 = vpop.permute.xlu0 %267 }
  0xbb   : > { %v344_v18 = vsel %vm321_vm0, %v717_v21, %v270_v16  ;;  %v343_v19 = vsel %vm321_vm0, %v720_v22, %v268_v17 }
  0xbc   : > { %399 = vst.msk [vmem:[%s775_s18 + $0x160] sm:$0xff] %vm354_vm1, %v344_v18 }
  0xbd   : > { %401 = vst.msk [vmem:[%s775_s18 + $0x170] sm:$0xff] %vm354_vm1, %v344_v18 }
  0xbe   : > { %396 = vst.msk [vmem:[%s775_s18 + $0x148] sm:$0xff] %vm354_vm1, %v343_v19 }
  0xbf   : > { %398 = vst.msk [vmem:[%s775_s18 + $0x158] sm:$0xff] %vm354_vm1, %v343_v19 }
  0xc2   : > { %v276_v20 = vpop.permute.xlu1 %275  ;;  %v274_v23 = vpop.permute.xlu0 %273 }
  0xc3   : > { %v347_v21 = vsel %vm321_vm0, %v732_v24, %v276_v20  ;;  %v346_v22 = vsel %vm321_vm0, %v735_v25, %v274_v23 }
  0xc4   : > { %404 = vst.msk [vmem:[%s775_s18 + $0x188] sm:$0xff] %vm354_vm1, %v347_v21 }
  0xc5   : > { %406 = vst.msk [vmem:[%s775_s18 + $0x198] sm:$0xff] %vm354_vm1, %v347_v21 }
  0xc6   : > { %403 = vst.msk [vmem:[%s775_s18 + $0x180] sm:$0xff] %vm354_vm1, %v346_v22 }
  0xc7   : > { %405 = vst.msk [vmem:[%s775_s18 + $0x190] sm:$0xff] %vm354_vm1, %v346_v22 }
  0xca   : > { %v282_v26 = vpop.permute.xlu1 %281  ;;  %v280_v29 = vpop.permute.xlu0 %279 }
  0xcb   : > { %v350_v24 = vsel %vm321_vm0, %v747_v27, %v282_v26  ;;  %v349_v25 = vsel %vm321_vm0, %v750_v28, %v280_v29 }
  0xcc   : > { %411 = vst.msk [vmem:[%s775_s18 + $0x1c0] sm:$0xff] %vm354_vm1, %v350_v24 }
  0xcd   : > { %413 = vst.msk [vmem:[%s775_s18 + $0x1d0] sm:$0xff] %vm354_vm1, %v350_v24 }
  0xce   : > { %408 = vst.msk [vmem:[%s775_s18 + $0x1a8] sm:$0xff] %vm354_vm1, %v349_v25 }
  0xcf   : > { %410 = vst.msk [vmem:[%s775_s18 + $0x1b8] sm:$0xff] %vm354_vm1, %v349_v25 }
  0xd2   : > { %v288_v32 = vpop.permute.xlu1 %287  ;;  %v286_v33 = vpop.permute.xlu0 %285 }
  0xd3   : > { %v353_v34 = vsel %vm321_vm0, %v762_v30, %v288_v32  ;;  %v352_v35 = vsel %vm321_vm0, %v765_v31, %v286_v33 }
  0xd4   : > { %416 = vst.msk [vmem:[%s775_s18 + $0x1e8] sm:$0xff] %vm354_vm1, %v353_v34 }
  0xd5   : > { %418 = vst.msk [vmem:[%s775_s18 + $0x1f8] sm:$0xff] %vm354_vm1, %v353_v34 }
  0xd6   : > { %415 = vst.msk [vmem:[%s775_s18 + $0x1e0] sm:$0xff] %vm354_vm1, %v352_v35 }
  0xd7   : > { %417 = vst.msk [vmem:[%s775_s18 + $0x1f0] sm:$0xff] %vm354_vm1, %v352_v35 }
  0xd8 PF: > { %s11_s8 = sadd.s32 1, %s575_s8   ;;  %s979_s6 = smov %s571_s7 }
  0xd9   : > { %p8_p5 = scmp.ge.s32.totalorder %s11_s8, 4   ;;  %s980_s7 = smov %s982_s9 }
  0xdb   :  { %10 = sbr.rel (!%p8_p5) target bundleno = 2 (0x2), region = 54 }

</bundles_post_ra>
